<compile_context>
chip_gen: v6e
topology: v6e:2x2x1
jax: 0.10.0
libtpu: 0.0.40
codegen_flags: <defaults>
</compile_context>

<pallas_src>
import math

import jax
import jax.numpy as jnp
from jax.experimental import pallas as pl
from jax.experimental.pallas import tpu as pltpu


def _action_encoder_kernel(actions_ref, emb_ref, pe_ref, out_ref):
    """One (batch row, seq tile) grid step.

    actions_ref: (1, TILE_S, 1) int32   action ids for this tile
    emb_ref:     (A, H)         float32 full embedding table (VMEM-resident)
    pe_ref:      (1, 1, H)      float32 positional-encoding row for this batch
    out_ref:     (1, TILE_S, H) float32
    """
    a = actions_ref[0]                                    # [TILE_S, 1] int32
    tile_s = a.shape[0]
    num_actions = emb_ref.shape[0]

    # One-hot gather via MXU matmul (small vocabulary path).
    ids = jax.lax.broadcasted_iota(jnp.int32, (tile_s, num_actions), 1)
    onehot = (ids == a).astype(jnp.float32)               # [TILE_S, A]
    emb = jnp.dot(onehot, emb_ref[...],
                  preferred_element_type=jnp.float32)     # [TILE_S, H]

    # Add the single PE row for this batch (broadcast over the TILE_S rows).
    out_ref[0] = emb + pe_ref[0]


def make_positional_encoding(hidden_size: int, max_len: int = 50) -> jnp.ndarray:
    """Replicates PositionalEncoding.pe buffer: shape [max_len, 1, hidden_size]."""
    position = jnp.arange(max_len, dtype=jnp.float32)[:, None]                 # [max_len, 1]
    div_term = jnp.exp(jnp.arange(0, hidden_size, 2, dtype=jnp.float32)
                       * (-math.log(10000.0) / hidden_size))                   # [H/2]
    pe = jnp.zeros((max_len, 1, hidden_size), dtype=jnp.float32)
    pe = pe.at[:, 0, 0::2].set(jnp.sin(position * div_term))
    pe = pe.at[:, 0, 1::2].set(jnp.cos(position * div_term))
    return pe


def action_encoder(actions: jnp.ndarray,
                   embedding_table: jnp.ndarray,
                   pe: jnp.ndarray,
                   *,
                   max_tile_s: int = 512) -> jnp.ndarray:
    """
    Args:
      actions:          [B, S] int32 action indices
      embedding_table:  [num_actions, H] float32
      pe:               [max_len, 1, H] float32 positional-encoding buffer
    Returns:
      [B, S, H] float32
    """
    b, s = actions.shape
    num_actions, h = embedding_table.shape
    max_len = pe.shape[0]
    if b > max_len:
        raise ValueError(f"batch size {b} exceeds positional-encoding max_len {max_len} "
                         "(module indexes pe by the batch dimension)")

    # Sequence tiling: either one full-S tile or multiples of 8 sublanes.
    if s <= max_tile_s:
        tile_s = s
    else:
        tile_s = max_tile_s - (max_tile_s % 8)
    n_s_tiles = pl.cdiv(s, tile_s)

    actions_3d = actions.reshape(b, s, 1).astype(jnp.int32)     # ids on sublanes
    pe_b = pe[:b].astype(jnp.float32)                           # [B, 1, H] (batch-indexed quirk)
    emb_f32 = embedding_table.astype(jnp.float32)

    # Advisory cost hint: mem-bound stream (output dominates) + tiny MXU work.
    cost = pl.CostEstimate(
        flops=int(2 * b * s * num_actions * h),
        transcendentals=0,
        bytes_accessed=int(4 * (b * s + num_actions * h + b * h + b * s * h)),
    )

    out = pl.pallas_call(
        _action_encoder_kernel,
        out_shape=jax.ShapeDtypeStruct((b, s, h), jnp.float32),
        grid_spec=pltpu.PrefetchScalarGridSpec(
            num_scalar_prefetch=0,
            grid=(b, n_s_tiles),
            in_specs=[
                # actions tile for (batch i, seq tile j)
                pl.BlockSpec((1, tile_s, 1), lambda i, j: (i, j, 0)),
                # embedding table: constant index -> stays resident in VMEM
                pl.BlockSpec((num_actions, h), lambda i, j: (0, 0)),
                # one PE row per batch index
                pl.BlockSpec((1, 1, h), lambda i, j: (i, 0, 0)),
            ],
            out_specs=pl.BlockSpec((1, tile_s, h), lambda i, j: (i, j, 0)),
        ),
        compiler_params=pltpu.CompilerParams(
            dimension_semantics=("parallel", "parallel")),
        cost_estimate=cost,
    )(actions_3d, emb_f32, pe_b)

    return out


if __name__ == "__main__":
    # Small shapes consistent with the module's forward.
    batch_size = 2
    seq_len = 8
    hidden_size = 32
    num_actions = 6
    max_len = 50

    key = jax.random.PRNGKey(0)
    k_emb, k_act = jax.random.split(key)

    # nn.Embedding default init: N(0, 1)
    embedding_table = jax.random.normal(k_emb, (num_actions, hidden_size), dtype=jnp.float32)
    pe = make_positional_encoding(hidden_size, max_len=max_len)

    actions = jax.random.randint(k_act, (batch_size, seq_len), 0, num_actions, dtype=jnp.int32)

    out = action_encoder(actions, embedding_table, pe)
    out = jax.block_until_ready(out)

    # Pure-JAX reference (same semantics as the PyTorch module).
    ref = embedding_table[actions] + pe[:batch_size]  # [B,S,H] + [B,1,H]
    assert out.shape == (batch_size, seq_len, hidden_size)
    assert jnp.allclose(out, ref, atol=1e-5, rtol=1e-5), "mismatch vs reference"

    print("KERNEL_OK")
</pallas_src>

<mosaic_0001>
module attributes {stable_mosaic.version = 11 : i64} {
  func.func @_action_encoder_kernel(%arg0: i32, %arg1: i32, %arg2: memref<1x8x1xi32, #tpu.memory_space<vmem>>, %arg3: memref<6x32xf32, #tpu.memory_space<vmem>>, %arg4: memref<1x1x32xf32, #tpu.memory_space<vmem>>, %arg5: memref<1x8x32xf32, #tpu.memory_space<vmem>>) attributes {dimension_semantics = [#tpu.dimension_semantics<parallel>, #tpu.dimension_semantics<parallel>], iteration_bounds = array<i64: 2, 1>, scalar_prefetch = 0 : i64, scratch_operands = 0 : i64, tpu.core_type = #tpu.core_type<tc>, window_params = [{transform_indices = @transform_0, window_bounds = array<i64: 1, 8, 1>}, {pipeline_mode = #tpu.pipeline_mode<synchronous>, transform_indices = @transform_1, window_bounds = array<i64: 6, 32>}, {transform_indices = @transform_2, window_bounds = array<i64: 1, 1, 32>}, {transform_indices = @transform_3, window_bounds = array<i64: 1, 8, 32>}]} {
    %c0 = arith.constant 0 : index
    %c0_0 = arith.constant 0 : index
    %c0_1 = arith.constant 0 : index
    %0 = vector.load %arg2[%c0, %c0_0, %c0_1] : memref<1x8x1xi32, #tpu.memory_space<vmem>>, vector<1x8x1xi32>
    %1 = vector.shape_cast %0 : vector<1x8x1xi32> to vector<8x1xi32>
    %2 = tpu.iota {dimensions = array<i32: 1>} : vector<8x6xi32>
    %3 = vector.broadcast %1 : vector<8x1xi32> to vector<8x6xi32>
    %4 = arith.cmpi eq, %2, %3 : vector<8x6xi32>
    %5 = arith.extui %4 : vector<8x6xi1> to vector<8x6xi32>
    %6 = arith.sitofp %5 : vector<8x6xi32> to vector<8x6xf32>
    %c0_2 = arith.constant 0 : index
    %c0_3 = arith.constant 0 : index
    %7 = vector.load %arg3[%c0_2, %c0_3] : memref<6x32xf32, #tpu.memory_space<vmem>>, vector<6x32xf32>
    %cst = arith.constant dense<0.000000e+00> : vector<8x32xf32>
    %8 = tpu.matmul %6, %7, %cst {dimension_numbers = #tpu.dot_dimension_numbers<[1], [0], [0], [1], [0, 0, 1, 1], [], []>} : vector<8x6xf32>, vector<6x32xf32>, vector<8x32xf32> -> vector<8x32xf32>
    %c0_4 = arith.constant 0 : index
    %c0_5 = arith.constant 0 : index
    %c0_6 = arith.constant 0 : index
    %9 = vector.load %arg4[%c0_4, %c0_5, %c0_6] : memref<1x1x32xf32, #tpu.memory_space<vmem>>, vector<1x1x32xf32>
    %10 = vector.shape_cast %9 : vector<1x1x32xf32> to vector<1x32xf32>
    %11 = vector.broadcast %10 : vector<1x32xf32> to vector<8x32xf32>
    %12 = arith.addf %8, %11 : vector<8x32xf32>
    %c0_7 = arith.constant 0 : index
    %c0_8 = arith.constant 0 : index
    %c0_9 = arith.constant 0 : index
    %13 = vector.load %arg5[%c0_7, %c0_8, %c0_9] : memref<1x8x32xf32, #tpu.memory_space<vmem>>, vector<1x8x32xf32>
    %14 = vector.shape_cast %13 : vector<1x8x32xf32> to vector<8x32xf32>
    %15 = vector.shape_cast %12 : vector<8x32xf32> to vector<1x8x32xf32>
    tpu.vector_store %arg5[%c0_7, %c0_8, %c0_9], %15 {strides = array<i32>} : memref<1x8x32xf32, #tpu.memory_space<vmem>>, vector<1x8x32xf32>,
    return
  }
  func.func @transform_0(%arg0: i32, %arg1: i32) -> (i32, i32, i32) {
    %c0_i32 = arith.constant 0 : i32
    %c0_i32_0 = arith.constant 0 : i32
    return %arg0, %arg1, %c0_i32 : i32, i32, i32
  }
  func.func @transform_1(%arg0: i32, %arg1: i32) -> (i32, i32) {
    %c0_i32 = arith.constant 0 : i32
    %c0_i32_0 = arith.constant 0 : i32
    %c0_i32_1 = arith.constant 0 : i32
    return %c0_i32, %c0_i32_0 : i32, i32
  }
  func.func @transform_2(%arg0: i32, %arg1: i32) -> (i32, i32, i32) {
    %c0_i32 = arith.constant 0 : i32
    %c0_i32_0 = arith.constant 0 : i32
    %c0_i32_1 = arith.constant 0 : i32
    return %arg0, %c0_i32, %c0_i32_0 : i32, i32, i32
  }
  func.func @transform_3(%arg0: i32, %arg1: i32) -> (i32, i32, i32) {
    %c0_i32 = arith.constant 0 : i32
    %c0_i32_0 = arith.constant 0 : i32
    return %arg0, %arg1, %c0_i32 : i32, i32, i32
  }
}

</mosaic_0001>

<bundles_post_ra>
// kernel: tpu_custom_call.1
= control target key start
LH: loop header
LB: loop body
LE: loop exit
PB: predicated region body
PF: predicated region fallthrough
CT: control target
= control target key end

     0   :  { %8 = vsyncpa [#allocation3], 0  ;;  %s691_s0 = inlined_call_operand.vmem [shape: s32[2,8,1], index: 0, kind: input, shape index: {}]   ;;  %s692_s1 = inlined_call_operand.vmem [shape: f32[6,32], index: 1, kind: input, shape index: {}]   ;;  %s693_s2 = inlined_call_operand.vmem [shape: f32[2,1,32], index: 2, kind: input, shape index: {}]   ;;  %s694_s3 = inlined_call_operand.hbm [shape: f32[2,8,32], index: 3, kind: output, shape index: {}]  }
   0x1   :  { %10 = vsyncpa [#allocation3 + $0x1], 0  ;;  %s580_s12 = smov 0   ;;  %s582_s13 = smov 0  }
   0x2   :  { %s584_s14 = smov 0   ;;  %s586_s15 = smov 0  }
   0x3   :  { %s588_s16 = smov 0   ;;  %s590_s17 = smov 0  }
   0x4 LB: > { %s397_s18 = sadd.s32 4294967295, %s554_s17   ;;  %s398_s19 = sadd.s32 4294967294, %s554_s17   ;;  %s554_s17 = sphi %s590_s17, %s16_s17   ;;  %s550_s16 = sphi %s588_s16, %s701_s16   ;;  %s546_s15 = sphi %s586_s15, %s700_s15   ;;  %s542_s14 = sphi %s584_s14, %s699_s14   ;;  %s538_s13 = sphi %s582_s13, %s698_s13   ;;  %s534_s12 = sphi %s580_s12, %s697_s12  }
   0x5   : > { %s28_s20 = sadd.s32 1, %s550_s16  ;;  %s112_s21 = sadd.s32 1, %s542_s14 }
   0x6   : > { %p30_p0 = scmp.ge.s32.totalorder %s28_s20, 2  ;;  %p122_p1 = scmp.ne.s32.totalorder %s542_s14, %s538_s13 }
   0x7   : > { %p123_p2 = scmp.eq.s32.totalorder %s397_s18, 1  ;;  %p128_p3 = scmp.ne.s32.totalorder %s538_s13, %s534_s12 }
   0x8   : > { %s703_s20 = smov (%p30_p0, %s28_s20), 0  ;;  %p129_p5 = scmp.eq.s32.totalorder %s398_s19, 1 }
   0x9   : > { %p620_p4 = por %p123_p2, %p122_p1  ;;  %s107_s23 = ssub.s32 %s550_s16, %s703_s20 }
   0xa   : > { %p401_p6 = scmp.ge.s32.totalorder %s554_s17, 1  ;;  %p110_p7 = scmp.eq.s32.totalorder %s107_s23, 0 }
   0xb   : > { %p627_p8 = por %p129_p5, %p128_p3  ;;  %p166_p9 = scmp.lt.s32.totalorder %s554_s17, 3 }
   0xc   : > { %s633_s25 = scalar_select %p110_p7, %s542_s14, %s112_s21  }
   0xd   : > { %p167_p10 = pnand %p401_p6, %p166_p9 }
   0xe   : > { %p195_p11 = scmp.lt.s32.totalorder (!%p167_p10), %s546_s15, 1  ;;  %s192_s6 = sand.u32 (!%p167_p10), 1, %s538_s13  }
   0xf   : > { %170 = sbr.rel (%p167_p10) target bundleno = 359 (0x167), region = 32  ;;  %s402_s7 = sshll.u32 (!%p167_p10), %s192_s6, 3 }
  0x10   : > { %s409_s11 = sshll.u32 (!%p167_p10), %s546_s15, 7  ;;  %s194_s18 = scalar_lea.vmem (!%p167_p10), [#allocation2], %s402_s7 }
  0x11   : > { %s317_s19 = sshll.u32 (!%p167_p10), %s194_s18, 4  ;;  %s651_s27 = scalar_lea.hbm (!%p167_p10), %s694_s3, %s409_s11  ;;  %s318_s19 = int_to_ptr.vmem [resolvable:$true] %s317_s19 }
  0x12   : > { %s303_s28 = scalar_lea.sflag (!%p167_p10), [#allocation3], %s192_s6 }
  0x14   : > { %v556_v0 = vmov 0   ;;  %v557_v1 = vmov 0.0   ;;  %s196_s26 = scalar_select %p195_p11, %s546_s15, 1  ;;  %v214_v2 = vld [vmem:[%s692_s1] sm:$0x3f]  ;;  %vm226_vm0 = vcmask 1045504   ;;  %v206_v4 = vlaneseq }
  0x15   : > { %477 = vset.pattern.permute.xlu0 %v556_v0  ;;  %414 = vmatprep.subr.mxu0 %v557_v1  ;;  %vm558_vm1 = vmmov 0   ;;  %vm222_vm2 = vcmask 48128   ;;  %vm300_vm4 = vcmask 261120   ;;  %s559_s15 = smov [#allocation2]  }
  0x16   : > { %s403_s29 = sshll.u32 %s196_s26, 3  ;;  %415 = vmatpush3.msk.msra.mxu0 %vm226_vm0, %v214_v2  ;;  %416 = vmatprep.mubr.msk.f32.mxu0 %vm558_vm1, %v557_v1  ;;  %v207_v5 = vand.u32 127, %v206_v4  ;;  %s204_s10 = scalar_lea.vmem %s693_s2, %s196_s26 }
  0x17   : > { %s201_s5 = scalar_lea.vmem %s691_s0, %s403_s29  ;;  %v405_v8 = vld [vmem:[%s204_s10] ss:$0 sm:$0xff]  ;;  %s478_s29 = scalar_lea.vmem %s318_s19, 128 }
  0x18   : > { %v205_v3 = vld [vmem:[%s201_s5] sm:$0xff]  ;;  %p479_p12 = scmp.ne.s32.totalorder %s318_s19, %s478_s29  ;;  %s482_s26 = sshll.u32 %s559_s15, 4  ;;  %s483_s26 = int_to_ptr.vmem [resolvable:$false] %s482_s26 }
  0x19   : > { %209 = vperm.xlu0 %477, %v205_v3   ;;  %s484_s30 = scalar_lea.vmem %s483_s26, 256  ;;  %p485_p1 = scmp.lt.s32.totalorder %s318_s19, %s483_s26 }
  0x1a   : > { %p480_p13 = pnand %p479_p12, %p620_p4  ;;  %p486_p2 = scmp.lt.s32.totalorder %s484_s30, %s478_s29 }
  0x1c   : > { %p481_p0 = pneg %p480_p13  ;;  %p487_p3 = por %p486_p2, %p485_p1 }
  0x1e   : > { %p488_p5 = pnand %p487_p3, %p481_p0 }
  0x94   : > { %v210_v6 = vpop.permute.xlu0 %209 }
  0x95   : > { %vm211_vm3 = vcmp.eq.s32.totalorder %v207_v5, %v210_v6 }
  0x96   : > { %v404_v7 = vsel %vm211_vm3, 1.0, %v557_v1 }
  0x97   : > { %417 = vmatmul.mubr.msk.f32.vlgmr.msra.gmra.mxu0 %vm222_vm2, %v404_v7 }
 0x157   : > { %v296_v9 = vpop.f32.mrf.mxu0 }
 0x158   : > { %v297_v10 = vadd.f32 %v405_v8, %v296_v9 }
 0x159   : > { %v418_v11 = vpop.f32.mrf.mxu0 }
 0x15a   : > { %301 = vst.msk [vmem:[%s194_s18] sm:$0xff] %vm300_vm4, %v297_v10 }
 0x15b   : > { %491 = shalt.err (!%p488_p5)
}
 0x15c   : > { %s492_s4 = scalar_lea.hbm %s651_s27, 128  ;;  %s496_s7 = scalar_lea.hbm %s694_s3, 256 }
 0x15d   : > { %p493_p6 = scmp.ne.s32.totalorder %s651_s27, %s492_s4  ;;  %p497_p10 = scmp.lt.s32.totalorder %s651_s27, %s694_s3 }
 0x15e   : > { %p498_p11 = scmp.lt.s32.totalorder %s496_s7, %s492_s4 }
 0x15f   : > { %p494_p7 = pnand %p493_p6, %p620_p4 }
 0x160   : > { %p499_p12 = por %p498_p11, %p497_p10 }
 0x161   : > { %p495_p9 = pneg %p494_p7 }
 0x163   : > { %p500_p13 = pnand %p499_p12, %p495_p9 }
 0x165   : > { %503 = shalt.err (!%p500_p13)
}
 0x166   : > { %419 = dma.vmem_to_hbm [thread:$0]  (%p620_p4), %s318_s19, 128, %s651_s27, %s303_s28  }
 0x167 PF: > { %p425_p0 = scmp.ge.s32.totalorder %s554_s17, 2  ;;  %s329_s10 = sand.u32 1, %s534_s12  }
 0x168   : > { %s330_s11 = scalar_lea.sflag [#allocation3], %s329_s10 }
 0x169   : > { %p422_p1 = pnand %p425_p0, %p627_p8 }
 0x16b   : > { %p423_p2 = pneg %p422_p1 }
 0x16d   : > { %529 = dma.done.wait (%p423_p2), %s330_s11, 128  }
 0x16e   : > { %531 = vsyncadd (%p423_p2), %s330_s11, 4294967168  ;;  %s16_s17 = sadd.s32 1, %s554_s17   ;;  %s697_s12 = smov %s538_s13 }
 0x16f   : > { %p13_p3 = scmp.ge.s32.totalorder %s16_s17, 4   ;;  %s698_s13 = smov %s542_s14 }
 0x170   : > { %s699_s14 = smov %s633_s25  ;;  %s700_s15 = smov %s550_s16 }
 0x171   : > { %s701_s16 = smov %s703_s20  ;;  %15 = sbr.rel (!%p13_p3) target bundleno = 4 (0x4), region = 70 }
 0x176   :  { %335 = vsyncpa [#allocation3], 1 }
 0x177   :  { %337 = vsyncpa [#allocation3 + $0x1], 1 }

</bundles_post_ra>
